<compile_context>
chip_gen: v7x
topology: tpu7x:2x2x1
jax: 0.10.0
libtpu: 0.0.40
codegen_flags: <defaults>
</compile_context>

<pallas_src>
import jax
import jax.numpy as jnp
from jax.experimental import pallas as pl
from jax.experimental.pallas import tpu as pltpu


# ----------------------------------------------------------------------------
# Recommended path: unsqueeze is a pure shape change -> zero-cost, no kernel.
# ----------------------------------------------------------------------------
def unsqueeze(x: jax.Array, dim: int = -1) -> jax.Array:
    """Exact equivalent of torch.Tensor.unsqueeze(dim). Metadata-only."""
    return jnp.expand_dims(x, axis=dim)


# ----------------------------------------------------------------------------
# Pallas identity-copy kernel (tiled, lane-dense, pipelined).
# ----------------------------------------------------------------------------
def _copy_kernel(x_ref, o_ref):
    o_ref[...] = x_ref[...]


def _chip_config():
    """Per-generation (tile_bytes, vmem_limit_bytes) for the copy pipeline."""
    kind = ""
    try:
        kind = jax.devices()[0].device_kind.lower()
    except Exception:
        pass
    if "v6" in kind:
        # v6e: 128 MiB physical VMEM; raise the 32 MiB scoped default so a
        # 4 MiB tile double-buffered on in+out (16 MiB) compiles comfortably.
        return 4 * 1024 * 1024, 48 * 1024 * 1024
    if "7" in kind:
        # v7x: 64 MiB physical / 32 MiB scoped default per TC.
        return 4 * 1024 * 1024, 32 * 1024 * 1024
    # v5e (16 MiB scoped default) and unknown chips: 2 MiB tiles -> 8 MiB
    # double-buffered footprint fits every scoped default, no limit needed.
    return 2 * 1024 * 1024, None


def _lane_dense_slab(n_elems: int):
    """Pick (rows, lanes) with lanes a large multiple of 128, widest first."""
    for lanes in (8192, 4096, 2048, 1024, 512, 256, 128):
        if n_elems % lanes == 0:
            return n_elems // lanes, lanes
    return None


def _pallas_copy_2d(flat2d: jax.Array, tile_bytes: int, vmem_limit) -> jax.Array:
    """Identity copy of a 2-D lane-dense slab via a row-tiled pipelined kernel."""
    rows, lanes = flat2d.shape
    itemsize = jnp.dtype(flat2d.dtype).itemsize
    # Sublane alignment of the second-minor dim (8 for 32-bit, 16 bf16, 32 int8).
    sub = 8 * max(1, 4 // itemsize)

    row_bytes = max(1, lanes * itemsize)
    max_rows = max(sub, (tile_bytes // row_bytes) // sub * sub)
    block_rows = min(rows, max_rows)
    if block_rows < rows:
        # Partial-extent blocks must be sublane-aligned; full-extent is always ok.
        block_rows = max(sub, (block_rows // sub) * sub)
    grid = (pl.cdiv(rows, block_rows),)

    cp_kwargs = dict(dimension_semantics=("parallel",))
    if vmem_limit is not None:
        cp_kwargs["vmem_limit_bytes"] = vmem_limit

    return pl.pallas_call(
        _copy_kernel,
        out_shape=jax.ShapeDtypeStruct(flat2d.shape, flat2d.dtype),
        grid=grid,
        in_specs=[pl.BlockSpec((block_rows, lanes), lambda i: (i, 0))],
        out_specs=pl.BlockSpec((block_rows, lanes), lambda i: (i, 0)),
        compiler_params=pltpu.CompilerParams(**cp_kwargs),
        cost_estimate=pl.CostEstimate(
            flops=0,
            transcendentals=0,
            bytes_accessed=2 * flat2d.size * itemsize,
        ),
    )(flat2d)


def unsqueeze_pallas(x: jax.Array, dim: int = -1) -> jax.Array:
    """torch.unsqueeze semantics with the data copy done in a Pallas kernel.

    Note: always materializes a copy (JAX value semantics), unlike torch's
    aliasing view.  Prefer `unsqueeze()` unless a copy is explicitly required.
    """
    nd_out = x.ndim + 1
    d = dim if dim >= 0 else dim + nd_out
    if not 0 <= d < nd_out:
        raise ValueError(f"invalid dim {dim} for rank-{x.ndim} input")
    out_shape = tuple(x.shape[:d]) + (1,) + tuple(x.shape[d:])

    if x.size == 0:
        return x.reshape(out_shape)

    tile_bytes, vmem_limit = _chip_config()

    flat = x.reshape(-1)
    n = flat.size
    slab = _lane_dense_slab(n)

    if slab is not None:
        y = _pallas_copy_2d(flat.reshape(slab), tile_bytes, vmem_limit)
        return y.reshape(out_shape)

    # Element count not a multiple of 128: pad to a lane-dense slab, copy,
    # then slice back (avoids masked vst.msk / short strided DMAs).
    pad_to = 1024 if n > 1024 else 128
    padded_n = ((n + pad_to - 1) // pad_to) * pad_to
    flat_p = jnp.pad(flat, (0, padded_n - n))
    slab = _lane_dense_slab(padded_n)
    y = _pallas_copy_2d(flat_p.reshape(slab), tile_bytes, vmem_limit)
    return y.reshape(-1)[:n].reshape(out_shape)


if __name__ == "__main__":
    key = jax.random.PRNGKey(0)
    # Small conv-style NCHW activation.
    x = jax.random.normal(key, (2, 4, 16, 16), dtype=jnp.float32)

    # Pallas copy path, module default dim=-1.
    y = jax.block_until_ready(unsqueeze_pallas(x, dim=-1))
    ref = jnp.expand_dims(x, axis=-1)
    assert y.shape == ref.shape == (2, 4, 16, 16, 1), y.shape
    assert y.dtype == ref.dtype
    assert bool(jnp.array_equal(y, ref))

    # Positive dim.
    y1 = jax.block_until_ready(unsqueeze_pallas(x, dim=1))
    assert y1.shape == (2, 1, 4, 16, 16)
    assert bool(jnp.array_equal(y1, jnp.expand_dims(x, axis=1)))

    # Sub-32-bit dtype copied natively (no wrapper-side packing pass).
    xb = x.astype(jnp.bfloat16)
    yb = jax.block_until_ready(unsqueeze_pallas(xb, dim=2))
    assert yb.shape == (2, 4, 1, 16, 16)
    assert yb.dtype == jnp.bfloat16
    assert bool(jnp.array_equal(yb, jnp.expand_dims(xb, axis=2)))

    # Element count not a multiple of 128 exercises the pad-and-slice path.
    xo = jax.random.normal(jax.random.PRNGKey(1), (3, 5, 7), dtype=jnp.float32)
    yo = jax.block_until_ready(unsqueeze_pallas(xo, dim=0))
    assert yo.shape == (1, 3, 5, 7)
    assert bool(jnp.array_equal(yo, jnp.expand_dims(xo, axis=0)))

    # Recommended zero-cost (metadata-only) path matches too.
    y_fast = jax.block_until_ready(unsqueeze(x, dim=-1))
    assert bool(jnp.array_equal(y_fast, ref))

    print("KERNEL_OK")
</pallas_src>

<mosaic_0001>
module attributes {stable_mosaic.version = 11 : i64} {
  func.func @_copy_kernel(%arg0: i32, %arg1: memref<1x2048xf32, #tpu.memory_space<vmem>>, %arg2: memref<1x2048xf32, #tpu.memory_space<vmem>>) attributes {dimension_semantics = [#tpu.dimension_semantics<parallel>], iteration_bounds = array<i64: 1>, scalar_prefetch = 0 : i64, scratch_operands = 0 : i64, tpu.core_type = #tpu.core_type<tc>, window_params = [{transform_indices = @transform_0, window_bounds = array<i64: 1, 2048>}, {transform_indices = @transform_1, window_bounds = array<i64: 1, 2048>}]} {
    %c0 = arith.constant 0 : index
    %c0_0 = arith.constant 0 : index
    %0 = vector.load %arg1[%c0, %c0_0] : memref<1x2048xf32, #tpu.memory_space<vmem>>, vector<1x2048xf32>
    %c0_1 = arith.constant 0 : index
    %c0_2 = arith.constant 0 : index
    %1 = vector.load %arg2[%c0_1, %c0_2] : memref<1x2048xf32, #tpu.memory_space<vmem>>, vector<1x2048xf32>
    tpu.vector_store %arg2[%c0_1, %c0_2], %0 {strides = array<i32>} : memref<1x2048xf32, #tpu.memory_space<vmem>>, vector<1x2048xf32>,
    return
  }
  func.func @transform_0(%arg0: i32) -> (i32, i32) {
    %c0_i32 = arith.constant 0 : i32
    %c0_i32_0 = arith.constant 0 : i32
    return %arg0, %c0_i32 : i32, i32
  }
  func.func @transform_1(%arg0: i32) -> (i32, i32) {
    %c0_i32 = arith.constant 0 : i32
    %c0_i32_0 = arith.constant 0 : i32
    return %arg0, %c0_i32 : i32, i32
  }
}

</mosaic_0001>

<bundles_post_ra>
// kernel: tpu_custom_call.1
= control target key start
LH: loop header
LB: loop body
LE: loop exit
PB: predicated region body
PF: predicated region fallthrough
CT: control target
= control target key end

     0   :  { %6 = vsyncpa [#allocation3], 0  ;;  %s126_s0 = inlined_call_operand.hbm [shape: f32[1,2048], index: 0, kind: input, shape index: {}]   ;;  %s127_s1 = inlined_call_operand.hbm [shape: f32[1,2048], index: 1, kind: output, shape index: {}]  }
   0x1   :  { %7 = vsyncpa [#allocation4], 0  ;;  %s90_s6 = smov [#allocation2]   ;;  %s42_s10 = scalar_lea.hbm %s126_s0, 256 }
   0x2   :  { %s14_s7 = sshll.u32 %s90_s6, 4  ;;  %p43_p0 = scmp.ne.s32.totalorder %s126_s0, %s42_s10  ;;  %s15_s7 = int_to_ptr.vmem [resolvable:$true] %s14_s7 }
   0x3   :  { %p46_p1 = scmp.lt.u32.totalorder %s42_s10, %s126_s0 }
   0x5   :  { %p48_p2 = pnand %p46_p1, %p43_p0 }
   0x7   :  { %51 = shalt.err (!%p48_p2)
}
   0x8   :  { %s52_s15 = scalar_lea.vmem %s15_s7, 256  ;;  %p57_p4 = scmp.lt.s32.totalorder %s15_s7, %s15_s7 }
   0x9   :  { %p53_p3 = scmp.ne.s32.totalorder %s15_s7, %s52_s15  ;;  %p58_p5 = scmp.lt.s32.totalorder %s52_s15, %s52_s15 }
   0xb   :  { %p59_p6 = por %p58_p5, %p57_p4 }
   0xd   :  { %p60_p7 = pnand %p59_p6, %p53_p3 }
   0xf   :  { %63 = shalt.err (!%p60_p7)
}
  0x10   :  { %17 = dma.hbm_to_vmem [thread:$0]  %s126_s0, 256, %s15_s7, [#allocation3]  }
  0x11   :  { %86 = dma.done.wait [#allocation3], 256  }
  0x12   :  { %87 = vsyncadd [#allocation3], 4294967040  ;;  %s91_s18 = smov [#allocation5]   ;;  %v21_v0 = vld [vmem:[#allocation2] sm:$0xff]  ;;  %v22_v1 = vld [vmem:[#allocation2 + $0x8] sm:$0xff] }
  0x13   :  { %s31_s19 = sshll.u32 %s91_s18, 4  ;;  %23 = vst [vmem:[#allocation5] sm:$0xff] %v21_v0  ;;  %24 = vst [vmem:[#allocation5 + $0x8] sm:$0xff] %v22_v1  ;;  %s32_s19 = int_to_ptr.vmem [resolvable:$true] %s31_s19 }
  0x14   :  { %s64_s20 = scalar_lea.vmem %s32_s19, 256  ;;  %p69_p9 = scmp.lt.s32.totalorder %s32_s19, %s32_s19 }
  0x15   :  { %p65_p8 = scmp.ne.s32.totalorder %s32_s19, %s64_s20  ;;  %p70_p10 = scmp.lt.s32.totalorder %s64_s20, %s64_s20 }
  0x17   :  { %p71_p11 = por %p70_p10, %p69_p9 }
  0x19   :  { %p72_p12 = pnand %p71_p11, %p65_p8 }
  0x1b   :  { %75 = shalt.err (!%p72_p12)
}
  0x1c   :  { %s76_s0 = scalar_lea.hbm %s127_s1, 256 }
  0x1d   :  { %p77_p13 = scmp.ne.s32.totalorder %s127_s1, %s76_s0  ;;  %p80_p0 = scmp.lt.u32.totalorder %s76_s0, %s127_s1 }
  0x1f   :  { %p82_p1 = pnand %p80_p0, %p77_p13 }
  0x21   :  { %85 = shalt.err (!%p82_p1)
}
  0x22   :  { %34 = dma.vmem_to_hbm [thread:$0]  %s32_s19, 256, %s127_s1, [#allocation4]  }
  0x23   :  { %88 = dma.done.wait [#allocation4], 256  }
  0x24   :  { %89 = vsyncadd [#allocation4], 4294967040 }
  0x25   :  { %38 = vsyncpa [#allocation3], 1 }
  0x26   :  { %39 = vsyncpa [#allocation4], 1 }

</bundles_post_ra>
